<compile_context>
chip_gen: v5e
topology: v5e:2x2
jax: 0.10.0
libtpu: 0.0.40
codegen_flags: <defaults>
</compile_context>

<pallas_src>
import functools

import jax
import jax.numpy as jnp
from jax.experimental import pallas as pl
from jax.experimental.pallas import tpu as pltpu


def _round_up(x, m):
    return (x + m - 1) // m * m


def _ce_rowloss_kernel(logits_ref, labels_ref, loss_ref, m_ref, s_ref, hit_ref):
    """One (row_tile, vocab_tile) block of masked cross-entropy.

    grid = (num_row_tiles, num_vocab_tiles); the vocab axis (last, "arbitrary")
    is the sequential reduction axis.  m/s/hit scratch carry the online-softmax
    state across vocab steps; per-row losses are stored once on the last step.
    """
    j = pl.program_id(1)
    num_vocab_steps = pl.num_programs(1)

    @pl.when(j == 0)
    def _():
        m_ref[...] = jnp.full_like(m_ref, -jnp.inf)
        s_ref[...] = jnp.zeros_like(s_ref)
        hit_ref[...] = jnp.zeros_like(hit_ref)

    logits = logits_ref[...].astype(jnp.float32)           # (TR, TV)
    labels = labels_ref[...]                                # (TR, 1) int32
    tv = logits.shape[-1]

    # Online softmax update over the vocab axis.
    m_old = m_ref[...]
    m_new = jnp.maximum(m_old, jnp.max(logits, axis=-1, keepdims=True))
    x = logits - m_new
    s_ref[...] = (s_ref[...] * jnp.exp(m_old - m_new)
                  + jnp.sum(jnp.exp(x), axis=-1, keepdims=True))
    m_ref[...] = m_new

    # logits[row, label[row]] via a lane-index compare: (1, TV) global column
    # ids broadcast against (TR, 1) labels.  The label hits exactly one vocab
    # tile, so accumulating the masked sum across tiles recovers the label
    # logit.  label == -1 (ignored / padded rows) never matches any column.
    col = jax.lax.broadcasted_iota(jnp.int32, (1, tv), 1) + j * tv
    hit_ref[...] += jnp.sum(jnp.where(col == labels, logits, 0.0),
                            axis=-1, keepdims=True)

    @pl.when(j == num_vocab_steps - 1)
    def _():
        valid = labels != -1                                # ignore_index = -1
        per_row = jnp.where(
            valid, m_ref[...] + jnp.log(s_ref[...]) - hit_ref[...], 0.0)
        loss_ref[...] = per_row.reshape(1, per_row.shape[0], 1)


def _masked_ce_loss_sum(logits, labels, row_tile=None, vocab_tile=None):
    """Sum over rows of (logsumexp(logits_row) - logits_row[label]) for rows
    with label != -1.  logits: (N, V); labels: (N,) int32."""
    N, V = logits.shape
    itemsize = jnp.dtype(logits.dtype).itemsize

    # --- tile selection (static, shape-based) -------------------------------
    if vocab_tile is None:
        vocab_tile = V                      # fallback: whole vocab in one tile
        for cand in (2048, 1024, 512, 256, 128):
            if V % cand == 0:
                vocab_tile = cand
                break
    assert V % vocab_tile == 0, "vocab_tile must divide V"

    if row_tile is None:
        # Largest row tile keeping a single logits buffer <= ~8 MiB so the
        # double-buffered pipeline sits comfortably inside v7x's 64 MiB VMEM
        # (and the default scoped limits on v5e/v6e), capped at 256 rows.
        budget = 8 * 1024 * 1024
        row_tile = max(8, min(256, (budget // (vocab_tile * itemsize)) // 8 * 8))
    row_tile = min(_round_up(row_tile, 8), _round_up(N, 8))

    # --- pad rows to a multiple of the row tile with ignored labels ---------
    n_pad = _round_up(N, row_tile)
    if n_pad != N:
        logits = jnp.pad(logits, ((0, n_pad - N), (0, 0)))
        labels = jnp.pad(labels, ((0, n_pad - N),), constant_values=-1)
    labels2d = labels.reshape(n_pad, 1).astype(jnp.int32)

    num_row_tiles = n_pad // row_tile
    num_vocab_tiles = V // vocab_tile

    tile_bytes = row_tile * vocab_tile * itemsize
    # Modest, generation-safe scoped-VMEM request (double-buffered logits tile
    # plus scratch/labels/output with headroom), capped well under v7x's 64 MiB.
    vmem_limit = int(min(48 * 2**20, max(32 * 2**20, 3 * tile_bytes + (4 << 20))))

    loss_rows = pl.pallas_call(
        _ce_rowloss_kernel,
        out_shape=jax.ShapeDtypeStruct((num_row_tiles, row_tile, 1), jnp.float32),
        grid_spec=pltpu.PrefetchScalarGridSpec(
            num_scalar_prefetch=0,
            grid=(num_row_tiles, num_vocab_tiles),
            in_specs=[
                pl.BlockSpec((row_tile, vocab_tile), lambda i, j: (i, j)),
                pl.BlockSpec((row_tile, 1), lambda i, j: (i, 0)),
            ],
            out_specs=pl.BlockSpec((1, row_tile, 1), lambda i, j: (i, 0, 0)),
            scratch_shapes=[pltpu.VMEM((row_tile, 1), jnp.float32)
                            for _ in range(3)],
        ),
        compiler_params=pltpu.CompilerParams(
            dimension_semantics=("parallel", "arbitrary"),
            vmem_limit_bytes=vmem_limit),
    )(logits, labels2d)

    # Padded / ignored rows contribute exactly 0.  Reducing per-tile partials
    # here (rather than a serialized in-kernel scalar) also avoids long f32
    # accumulation chains.
    return jnp.sum(loss_rows)


def _ce_mean_jax(logits, labels):
    """Plain-JAX CrossEntropyLoss(ignore_index=-1, reduction='mean')."""
    logits = logits.astype(jnp.float32)
    lse = jax.nn.logsumexp(logits, axis=-1)
    safe = jnp.where(labels == -1, 0, labels)
    label_logit = jnp.take_along_axis(logits, safe[:, None], axis=-1)[:, 0]
    valid = labels != -1
    losses = jnp.where(valid, lse - label_logit, 0.0)
    return jnp.sum(losses) / jnp.sum(valid.astype(jnp.float32))


def bert_pretraining_criterion(prediction_scores, seq_relationship_score,
                               masked_lm_labels, next_sentence_labels,
                               vocab_size, row_tile=None, vocab_tile=None):
    """JAX/Pallas equivalent of BertPretrainingCriterion.forward."""
    B, S, V = prediction_scores.shape
    assert V == vocab_size

    # Masked-LM cross entropy over (B*S, V)  — Pallas kernel (HBM-bound part).
    mlm_logits = prediction_scores.reshape(B * S, V)
    mlm_labels = masked_lm_labels.reshape(B * S).astype(jnp.int32)
    mlm_sum = _masked_ce_loss_sum(mlm_logits, mlm_labels,
                                  row_tile=row_tile, vocab_tile=vocab_tile)
    mlm_cnt = jnp.sum((mlm_labels != -1).astype(jnp.float32))
    masked_lm_loss = mlm_sum / mlm_cnt   # NaN if every label is -1 (matches torch)

    # Next-sentence cross entropy over (B, 2) — tiny; plain JAX (a lane width
    # of 2 would force masked ops and an extra kernel launch for ~µs of work).
    nsp_logits = seq_relationship_score.reshape(-1, 2)
    nsp_labels = next_sentence_labels.reshape(-1).astype(jnp.int32)
    next_sentence_loss = _ce_mean_jax(nsp_logits, nsp_labels)

    return masked_lm_loss + next_sentence_loss


def _reference(prediction_scores, seq_relationship_score,
               masked_lm_labels, next_sentence_labels, vocab_size):
    """Pure-JAX reference for the correctness check."""
    B, S, V = prediction_scores.shape
    return (_ce_mean_jax(prediction_scores.reshape(-1, V),
                         masked_lm_labels.reshape(-1)) +
            _ce_mean_jax(seq_relationship_score.reshape(-1, 2),
                         next_sentence_labels.reshape(-1)))


if __name__ == "__main__":
    batch_size = 3
    max_len = 20
    vocab_size = 1024

    key = jax.random.PRNGKey(0)
    k1, k2, k3, k4, k5 = jax.random.split(key, 5)

    prediction_scores = jax.random.normal(
        k1, (batch_size, max_len, vocab_size), dtype=jnp.float32)
    seq_relationship_score = jax.random.normal(
        k2, (batch_size, 2), dtype=jnp.float32)

    # Labels: valid vocab ids with some positions set to ignore_index (-1).
    masked_lm_labels = jax.random.randint(
        k3, (batch_size, max_len), 0, vocab_size, dtype=jnp.int32)
    ignore_mask = jax.random.bernoulli(k4, 0.3, (batch_size, max_len))
    masked_lm_labels = jnp.where(ignore_mask, -1, masked_lm_labels)
    masked_lm_labels = masked_lm_labels.at[0, 0].set(5)  # ensure >=1 valid row
    next_sentence_labels = jax.random.randint(
        k5, (batch_size,), 0, 2, dtype=jnp.int32)

    # Small tile overrides so the tiny demo exercises the real code paths:
    # 60 rows -> padded to 64 (2 row tiles of 32), 1024 vocab -> 4 vocab tiles
    # (multi-step online softmax).  At production shapes leave them as None
    # (auto-picked ~(256, 2048)).
    fn = jax.jit(functools.partial(bert_pretraining_criterion,
                                   vocab_size=vocab_size,
                                   row_tile=32, vocab_tile=256))

    total_loss = jax.block_until_ready(
        fn(prediction_scores, seq_relationship_score,
           masked_lm_labels, next_sentence_labels))

    ref = jax.block_until_ready(_reference(
        prediction_scores, seq_relationship_score,
        masked_lm_labels, next_sentence_labels, vocab_size))

    assert jnp.allclose(total_loss, ref, rtol=1e-5, atol=1e-5), (total_loss, ref)
    print("KERNEL_OK")
</pallas_src>

<mosaic_0001>
module attributes {stable_mosaic.version = 11 : i64} {
  func.func @_ce_rowloss_kernel(%arg0: i32, %arg1: i32, %arg2: memref<32x256xf32, #tpu.memory_space<vmem>>, %arg3: memref<32x1xi32, #tpu.memory_space<vmem>>, %arg4: memref<1x32x1xf32, #tpu.memory_space<vmem>>, %arg5: memref<32x1xf32, #tpu.memory_space<vmem>>, %arg6: memref<32x1xf32, #tpu.memory_space<vmem>>, %arg7: memref<32x1xf32, #tpu.memory_space<vmem>>) attributes {dimension_semantics = [#tpu.dimension_semantics<parallel>, #tpu.dimension_semantics<arbitrary>], iteration_bounds = array<i64: 2, 4>, scalar_prefetch = 0 : i64, scratch_operands = 3 : i64, tpu.core_type = #tpu.core_type<tc>, window_params = [{transform_indices = @transform_0, window_bounds = array<i64: 32, 256>}, {transform_indices = @transform_1, window_bounds = array<i64: 32, 1>}, {transform_indices = @transform_2, window_bounds = array<i64: 1, 32, 1>}]} {
    %c0_i32 = arith.constant 0 : i32
    %0 = arith.cmpi eq, %arg1, %c0_i32 : i32
    %1 = arith.extui %0 : i1 to i32
    %c0_i32_0 = arith.constant 0 : i32
    %2 = arith.cmpi ne, %1, %c0_i32_0 : i32
    scf.if %2 {
      %cst_20 = arith.constant 0xFF800000 : f32
      %38 = vector.broadcast %cst_20 : f32 to vector<32x1xf32>
      %c0_21 = arith.constant 0 : index
      %c0_22 = arith.constant 0 : index
      %39 = vector.load %arg5[%c0_21, %c0_22] : memref<32x1xf32, #tpu.memory_space<vmem>>, vector<32x1xf32>
      tpu.vector_store %arg5[%c0_21, %c0_22], %38 {strides = array<i32>} : memref<32x1xf32, #tpu.memory_space<vmem>>, vector<32x1xf32>,
      %cst_23 = arith.constant 0.000000e+00 : f32
      %40 = vector.broadcast %cst_23 : f32 to vector<32x1xf32>
      %c0_24 = arith.constant 0 : index
      %c0_25 = arith.constant 0 : index
      %41 = vector.load %arg6[%c0_24, %c0_25] : memref<32x1xf32, #tpu.memory_space<vmem>>, vector<32x1xf32>
      tpu.vector_store %arg6[%c0_24, %c0_25], %40 {strides = array<i32>} : memref<32x1xf32, #tpu.memory_space<vmem>>, vector<32x1xf32>,
      %cst_26 = arith.constant 0.000000e+00 : f32
      %42 = vector.broadcast %cst_26 : f32 to vector<32x1xf32>
      %c0_27 = arith.constant 0 : index
      %c0_28 = arith.constant 0 : index
      %43 = vector.load %arg7[%c0_27, %c0_28] : memref<32x1xf32, #tpu.memory_space<vmem>>, vector<32x1xf32>
      tpu.vector_store %arg7[%c0_27, %c0_28], %42 {strides = array<i32>} : memref<32x1xf32, #tpu.memory_space<vmem>>, vector<32x1xf32>,
    } else {
    }
    %c0 = arith.constant 0 : index
    %c0_1 = arith.constant 0 : index
    %3 = vector.load %arg2[%c0, %c0_1] : memref<32x256xf32, #tpu.memory_space<vmem>>, vector<32x256xf32>
    %c0_2 = arith.constant 0 : index
    %c0_3 = arith.constant 0 : index
    %4 = vector.load %arg3[%c0_2, %c0_3] : memref<32x1xi32, #tpu.memory_space<vmem>>, vector<32x1xi32>
    %c0_4 = arith.constant 0 : index
    %c0_5 = arith.constant 0 : index
    %5 = vector.load %arg5[%c0_4, %c0_5] : memref<32x1xf32, #tpu.memory_space<vmem>>, vector<32x1xf32>
    %cst = arith.constant dense<0xFF800000> : vector<32xf32>
    %6 = vector.multi_reduction <maximumf>, %3, %cst [1] : vector<32x256xf32> to vector<32xf32>
    %7 = vector.shape_cast %6 : vector<32xf32> to vector<32x1xf32>
    %8 = arith.maximumf %5, %7 : vector<32x1xf32>
    %9 = vector.broadcast %8 : vector<32x1xf32> to vector<32x256xf32>
    %10 = arith.subf %3, %9 : vector<32x256xf32>
    %c0_6 = arith.constant 0 : index
    %c0_7 = arith.constant 0 : index
    %11 = vector.load %arg6[%c0_6, %c0_7] : memref<32x1xf32, #tpu.memory_space<vmem>>, vector<32x1xf32>
    %12 = arith.subf %5, %8 : vector<32x1xf32>
    %13 = math.exp %12 : vector<32x1xf32>
    %14 = arith.mulf %11, %13 : vector<32x1xf32>
    %15 = math.exp %10 : vector<32x256xf32>
    %cst_8 = arith.constant dense<0.000000e+00> : vector<32xf32>
    %16 = vector.multi_reduction <add>, %15, %cst_8 [1] : vector<32x256xf32> to vector<32xf32>
    %17 = vector.shape_cast %16 : vector<32xf32> to vector<32x1xf32>
    %18 = arith.addf %14, %17 : vector<32x1xf32>
    %c0_9 = arith.constant 0 : index
    %c0_10 = arith.constant 0 : index
    %19 = vector.load %arg6[%c0_9, %c0_10] : memref<32x1xf32, #tpu.memory_space<vmem>>, vector<32x1xf32>
    tpu.vector_store %arg6[%c0_9, %c0_10], %18 {strides = array<i32>} : memref<32x1xf32, #tpu.memory_space<vmem>>, vector<32x1xf32>,
    %c0_11 = arith.constant 0 : index
    %c0_12 = arith.constant 0 : index
    %20 = vector.load %arg5[%c0_11, %c0_12] : memref<32x1xf32, #tpu.memory_space<vmem>>, vector<32x1xf32>
    tpu.vector_store %arg5[%c0_11, %c0_12], %8 {strides = array<i32>} : memref<32x1xf32, #tpu.memory_space<vmem>>, vector<32x1xf32>,
    %21 = tpu.iota {dimensions = array<i32: 1>} : vector<1x256xi32>
    %c256_i32 = arith.constant 256 : i32
    %22 = arith.muli %arg1, %c256_i32 : i32
    %23 = vector.broadcast %22 : i32 to vector<1x256xi32>
    %24 = arith.addi %21, %23 : vector<1x256xi32>
    %c0_13 = arith.constant 0 : index
    %c0_14 = arith.constant 0 : index
    %25 = vector.load %arg7[%c0_13, %c0_14] : memref<32x1xf32, #tpu.memory_space<vmem>>, vector<32x1xf32>
    %26 = vector.broadcast %24 : vector<1x256xi32> to vector<32x256xi32>
    %27 = vector.broadcast %4 : vector<32x1xi32> to vector<32x256xi32>
    %28 = arith.cmpi eq, %26, %27 : vector<32x256xi32>
    %cst_15 = arith.constant 0.000000e+00 : f32
    %29 = vector.broadcast %cst_15 : f32 to vector<32x256xf32>
    %30 = arith.select %28, %3, %29 : vector<32x256xi1>, vector<32x256xf32>
    %cst_16 = arith.constant dense<0.000000e+00> : vector<32xf32>
    %31 = vector.multi_reduction <add>, %30, %cst_16 [1] : vector<32x256xf32> to vector<32xf32>
    %32 = vector.shape_cast %31 : vector<32xf32> to vector<32x1xf32>
    %33 = arith.addf %25, %32 : vector<32x1xf32>
    %c0_17 = arith.constant 0 : index
    %c0_18 = arith.constant 0 : index
    %34 = vector.load %arg7[%c0_17, %c0_18] : memref<32x1xf32, #tpu.memory_space<vmem>>, vector<32x1xf32>
    tpu.vector_store %arg7[%c0_17, %c0_18], %33 {strides = array<i32>} : memref<32x1xf32, #tpu.memory_space<vmem>>, vector<32x1xf32>,
    %c3_i32 = arith.constant 3 : i32
    %35 = arith.cmpi eq, %arg1, %c3_i32 : i32
    %36 = arith.extui %35 : i1 to i32
    %c0_i32_19 = arith.constant 0 : i32
    %37 = arith.cmpi ne, %36, %c0_i32_19 : i32
    scf.if %37 {
      %c-1_i32 = arith.constant -1 : i32
      %38 = vector.broadcast %c-1_i32 : i32 to vector<32x1xi32>
      %39 = arith.cmpi ne, %4, %38 : vector<32x1xi32>
      %c0_20 = arith.constant 0 : index
      %c0_21 = arith.constant 0 : index
      %40 = vector.load %arg5[%c0_20, %c0_21] : memref<32x1xf32, #tpu.memory_space<vmem>>, vector<32x1xf32>
      %c0_22 = arith.constant 0 : index
      %c0_23 = arith.constant 0 : index
      %41 = vector.load %arg6[%c0_22, %c0_23] : memref<32x1xf32, #tpu.memory_space<vmem>>, vector<32x1xf32>
      %42 = math.log %41 : vector<32x1xf32>
      %43 = arith.addf %40, %42 : vector<32x1xf32>
      %c0_24 = arith.constant 0 : index
      %c0_25 = arith.constant 0 : index
      %44 = vector.load %arg7[%c0_24, %c0_25] : memref<32x1xf32, #tpu.memory_space<vmem>>, vector<32x1xf32>
      %45 = arith.subf %43, %44 : vector<32x1xf32>
      %cst_26 = arith.constant 0.000000e+00 : f32
      %46 = vector.broadcast %cst_26 : f32 to vector<32x1xf32>
      %47 = arith.select %39, %45, %46 : vector<32x1xi1>, vector<32x1xf32>
      %48 = vector.shape_cast %47 : vector<32x1xf32> to vector<1x32x1xf32>
      %c0_27 = arith.constant 0 : index
      %c0_28 = arith.constant 0 : index
      %c0_29 = arith.constant 0 : index
      %49 = vector.load %arg4[%c0_27, %c0_28, %c0_29] : memref<1x32x1xf32, #tpu.memory_space<vmem>>, vector<1x32x1xf32>
      tpu.vector_store %arg4[%c0_27, %c0_28, %c0_29], %48 {strides = array<i32>} : memref<1x32x1xf32, #tpu.memory_space<vmem>>, vector<1x32x1xf32>,
    } else {
    }
    return
  }
  func.func @transform_0(%arg0: i32, %arg1: i32) -> (i32, i32) {
    %c0_i32 = arith.constant 0 : i32
    return %arg0, %arg1 : i32, i32
  }
  func.func @transform_1(%arg0: i32, %arg1: i32) -> (i32, i32) {
    %c0_i32 = arith.constant 0 : i32
    %c0_i32_0 = arith.constant 0 : i32
    return %arg0, %c0_i32 : i32, i32
  }
  func.func @transform_2(%arg0: i32, %arg1: i32) -> (i32, i32, i32) {
    %c0_i32 = arith.constant 0 : i32
    %c0_i32_0 = arith.constant 0 : i32
    %c0_i32_1 = arith.constant 0 : i32
    return %arg0, %c0_i32, %c0_i32_0 : i32, i32, i32
  }
}

</mosaic_0001>

<bundles_post_ra>
// kernel: bert_pretraining_criterion.1
= control target key start
LH: loop header
LB: loop body
LE: loop exit
PB: predicated region body
PF: predicated region fallthrough
CT: control target
= control target key end

     0   :  { %s737_s9 = smov 0   ;;  %s739_s10 = smov 0   ;;  %s965_s0 = inlined_call_operand.vmem [shape: f32[64,1024], index: 0, kind: input, shape index: {}]   ;;  %s966_s1 = inlined_call_operand.vmem [shape: s32[64,1], index: 1, kind: input, shape index: {}]   ;;  %s967_s2 = inlined_call_operand.vmem [shape: f32[2,32,1], index: 2, kind: output, shape index: {}]  }
   0x1   :  { %s741_s11 = smov 0   ;;  %s743_s12 = smov 0  }
   0x2   :  { %s745_s13 = smov 0   ;;  %s747_s14 = smov 0  }
   0x3   :  { %s749_s15 = smov 0  }
   0x4 LB: > { %s21_s16 = sadd.s32 1, %s709_s13  ;;  %s24_s17 = sadd.s32 1, %s713_s14  ;;  %s717_s15 = sphi %s749_s15, %s12_s15   ;;  %s713_s14 = sphi %s747_s14, %s973_s14   ;;  %s709_s13 = sphi %s745_s13, %s972_s13   ;;  %s705_s12 = sphi %s743_s12, %s971_s12   ;;  %s701_s11 = sphi %s741_s11, %s970_s11   ;;  %s697_s10 = sphi %s739_s10, %s969_s10   ;;  %s693_s9 = sphi %s737_s9, %s968_s9  }
   0x5   : > { %p22_p0 = scmp.ge.s32.totalorder %s21_s16, 4  ;;  %p40_p1 = scmp.ne.s32.totalorder %s697_s10, %s693_s9 }
   0x6   : > { %p41_p2 = scmp.eq.s32.totalorder %s717_s15, 0  ;;  %s33_s21 = sadd.s32 1, %s697_s10 }
   0x7   : > { %s975_s16 = smov (%p22_p0, %s21_s16), 0  ;;  %s977_s17 = smov (!%p22_p0, %s24_s17), %s713_s14 }
   0x8   : > { %p42_p3 = por %p41_p2, %p40_p1  ;;  %p26_p4 = scmp.ge.s32.totalorder %s977_s17, 2 }
   0x9   : > { %s29_s18 = ssub.s32 %s709_s13, %s975_s16  ;;  %p550_p6 = scmp.ge.s32.totalorder %s717_s15, 8 }
   0xa   : > { %s979_s17 = smov (%p26_p4, %s977_s17), 0 }
   0xb   : > { %s28_s19 = ssub.s32 %s713_s14, %s979_s17  ;;  %118 = sbr.rel (%p550_p6) target bundleno = 31 (0x1f), region = 16 }
   0xc   : > { %s30_s20 = sor.u32 %s29_s18, %s28_s19 }
   0xd   : > { %p31_p5 = scmp.eq.s32.totalorder %s30_s20, 0 }
   0xf   : > { %s788_s22 = scalar_select %p31_p5, %s697_s10, %s33_s21  }
  0x10   : > { %121 = sbr.rel (!%p42_p3) target bundleno = 31 (0x1f), region = 20  ;;  %s123_s23 = sand.u32 (%p42_p3), 1, %s697_s10  }
  0x11   : > { %s553_s24 = sshll.u32 (%p42_p3), %s709_s13, 1  ;;  %s551_s25 = sshll.u32 (%p42_p3), %s123_s23, 6 }
  0x12   : > { %s567_s26 = sshll.u32 (%p42_p3), %s713_s14, 5  ;;  %s125_s4 = scalar_lea.vmem (%p42_p3), [#allocation5], %s551_s25 }
  0x13   : > { %s129_s27 = sadd.s32 (%p42_p3), %s567_s26, %s553_s24 }
  0x14   : > { %s555_s28 = sshll.u32 (%p42_p3), %s129_s27, 3 }
  0x15   : > { %s131_s3 = scalar_lea.vmem %s965_s0, %s555_s28 }
  0x16   : > { %v144_v0 = vld [vmem:[%s131_s3] sm:$0xff]  ;;  %v146_v1 = vld [vmem:[%s131_s3 + $0x8] sm:$0xff] }
  0x17   : > { %v148_v2 = vld [vmem:[%s131_s3 + $0x40] sm:$0xff]  ;;  %145 = vst [vmem:[%s125_s4] sm:$0xff] %v144_v0  ;;  %v150_v3 = vld [vmem:[%s131_s3 + $0x48] sm:$0xff] }
  0x18   : > { %147 = vst [vmem:[%s125_s4 + $0x8] sm:$0xff] %v146_v1  ;;  %v152_v4 = vld [vmem:[%s131_s3 + $0x80] sm:$0xff]  ;;  %v154_v5 = vld [vmem:[%s131_s3 + $0x88] sm:$0xff] }
  0x19   : > { %149 = vst [vmem:[%s125_s4 + $0x10] sm:$0xff] %v148_v2  ;;  %v156_v6 = vld [vmem:[%s131_s3 + $0xc0] sm:$0xff]  ;;  %v158_v7 = vld [vmem:[%s131_s3 + $0xc8] sm:$0xff] }
  0x1a   : > { %151 = vst [vmem:[%s125_s4 + $0x18] sm:$0xff] %v150_v3 }
  0x1b   : > { %153 = vst [vmem:[%s125_s4 + $0x20] sm:$0xff] %v152_v4 }
  0x1c   : > { %155 = vst [vmem:[%s125_s4 + $0x28] sm:$0xff] %v154_v5 }
  0x1d   : > { %157 = vst [vmem:[%s125_s4 + $0x30] sm:$0xff] %v156_v6 }
  0x1e   : > { %159 = vst [vmem:[%s125_s4 + $0x38] sm:$0xff] %v158_v7 }
  0x1f PF: > { %p556_p7 = scmp.ge.s32.totalorder %s717_s15, 1  ;;  %p173_p8 = scmp.lt.s32.totalorder %s717_s15, 9 }
  0x21   : > { %p174_p9 = pnand %p556_p7, %p173_p8 }
  0x22   : > { %s180_s5 = sand.u32 (!%p174_p9), 1, %s693_s9   ;;  %s558_s6 = sshll.u32 (!%p174_p9), %s705_s12, 2 }
  0x23   : > { %177 = sbr.rel (%p174_p9) target bundleno = 465 (0x1d1), region = 47  ;;  %s557_s7 = sshll.u32 (!%p174_p9), %s180_s5, 6 }
  0x24   : > { %p209_p10 = scmp.lt.s32.totalorder (!%p174_p9), %s558_s6, 7  ;;  %p214_p11 = scmp.lt.s32.totalorder (!%p174_p9), %s705_s12, 1 }
  0x25   : > { %s182_s26 = scalar_lea.vmem (!%p174_p9), [#allocation5], %s557_s7  ;;  %p562_p12 = scmp.ne.s32.totalorder (!%p174_p9), %s701_s11, 0 }
  0x28   : > { %s981_s6 = smov (!%p209_p10, %s558_s6), 7  ;;  %s983_s12 = smov (!%p214_p11, %s705_s12), 1 }
  0x29   : > { %s559_s8 = sshll.u32 %s981_s6, 3  ;;  %s568_s21 = sshll.u32 %s983_s12, 5 }
  0x2a   : > { %s806_s20 = scalar_lea.vmem %s966_s1, %s559_s8  ;;  %s811_s25 = scalar_lea.vmem %s967_s2, %s568_s21 }
  0x2b   : > { %222 = sbr.rel (%p562_p12) target bundleno = 61 (0x3d), region = 55 }
  0x30   : > { %vm223_vm0 = vcmask 7168   ;;  %v719_v8 = vmov -inf   ;;  %v720_v9 = vmov 0.0  }
  0x31   : > { %224 = vst.msk [vmem:[#allocation2] sm:$0xff] %vm223_vm0, %v719_v8 }
  0x32   : > { %225 = vst.msk [vmem:[#allocation2 + $0x8] sm:$0xff] %vm223_vm0, %v719_v8 }
  0x33   : > { %226 = vst.msk [vmem:[#allocation2 + $0x10] sm:$0xff] %vm223_vm0, %v719_v8 }
  0x34   : > { %227 = vst.msk [vmem:[#allocation2 + $0x18] sm:$0xff] %vm223_vm0, %v719_v8 }
  0x35   : > { %228 = vst.msk [vmem:[#allocation3] sm:$0xff] %vm223_vm0, %v720_v9 }
  0x36   : > { %229 = vst.msk [vmem:[#allocation3 + $0x8] sm:$0xff] %vm223_vm0, %v720_v9 }
  0x37   : > { %230 = vst.msk [vmem:[#allocation3 + $0x10] sm:$0xff] %vm223_vm0, %v720_v9 }
  0x38   : > { %231 = vst.msk [vmem:[#allocation3 + $0x18] sm:$0xff] %vm223_vm0, %v720_v9 }
  0x39   : > { %232 = vst.msk [vmem:[#allocation4] sm:$0xff] %vm223_vm0, %v720_v9 }
  0x3a   : > { %233 = vst.msk [vmem:[#allocation4 + $0x8] sm:$0xff] %vm223_vm0, %v720_v9 }
  0x3b   : > { %234 = vst.msk [vmem:[#allocation4 + $0x10] sm:$0xff] %vm223_vm0, %v720_v9 }
  0x3c   : > { %235 = vst.msk [vmem:[#allocation4 + $0x18] sm:$0xff] %vm223_vm0, %v720_v9 }
  0x3d PF: > { %v814_v10 = vld [vmem:[%s182_s26 + $0x20] sm:$0xff]  ;;  %v816_v11 = vld [vmem:[%s182_s26 + $0x28] sm:$0xff]  ;;  %v826_v16 = vld [vmem:[%s182_s26 + $0x30] sm:$0xff]  ;;  %v721_v22 = vmov 0   ;;  %vm348_vm1 = vcmask 7168   ;;  %v357_v46 = vlaneseq  ;;  %s563_s9 = sshll.u32 %s701_s11, 8 }
  0x3e   : > { %v818_v12 = vld [vmem:[%s182_s26] sm:$0xff]  ;;  %v258_v13 = vmax.f32 %v814_v10, %v816_v11  ;;  %v822_v14 = vld [vmem:[%s182_s26 + $0x8] sm:$0xff]  ;;  %v828_v17 = vld [vmem:[%s182_s26 + $0x38] sm:$0xff]  ;;  %629 = vset.pattern.permute.xlu0 %v721_v22  ;;  %628 = vset.pattern.permute.xlu2 %v721_v22  ;;  %v361_v54 = vstv %s563_s9  ;;  %p564_p13 = scmp.ne.s32.totalorder %s701_s11, 3 }
  0x3f   : > { %v252_v15 = vmax.f32 %v818_v12, %v822_v14  ;;  %v830_v18 = vld [vmem:[%s182_s26 + $0x10] sm:$0xff]  ;;  %v832_v19 = vld [vmem:[%s182_s26 + $0x18] sm:$0xff]  ;;  %v261_v20 = vmax.f32 %v826_v16, %v828_v17  ;;  %630 = vset.pattern.permute.xlu1 %v721_v22  ;;  %v840_v24 = vld [vmem:[#allocation2] sm:$0xff]  ;;  %v358_v49 = vand.u32 127, %v357_v46 }
  0x40   : > { %259 = vmax.xlane.f32.xlu1 %v258_v13  ;;  %v255_v21 = vmax.f32 %v830_v18, %v832_v19  ;;  %v838_v23 = vld [vmem:[#allocation2 + $0x10] sm:$0xff]  ;;  %v858_v31 = vld [vmem:[#allocation2 + $0x18] sm:$0xff]  ;;  %v860_v32 = vld [vmem:[#allocation2 + $0x8] sm:$0xff] }
  0x41   : > { %253 = vmax.xlane.f32.xlu0 %v252_v15  ;;  %v879_v39 = vld [vmem:[%s806_s20] sm:$0xff]  ;;  %v883_v40 = vld [vmem:[%s806_s20 + $0x8] sm:$0xff]  ;;  %v887_v41 = vld [vmem:[%s806_s20 + $0x10] sm:$0xff]  ;;  %v359_v52 = vadd.s32 128, %v358_v49  ;;  %v362_v59 = vadd.s32 %v361_v54, %v358_v49 }
  0x42   : > { %v891_v42 = vld [vmem:[%s806_s20 + $0x18] sm:$0xff] }
  0x43   : > { %v363_v60 = vadd.s32 %v361_v54, %v359_v52 }
  0x48   : > { %262 = vmax.xlane.f32.xlu1 %v261_v20 }
  0x49   : > { %256 = vmax.xlane.f32.xlu0 %v255_v21 }
  0xb3   : > { %v260_v25 = vpop.xlane.xlu1 %259 }
  0xb4   : > { %v843_v26 = vmax.f32 %v838_v23, %v260_v25  ;;  %v254_v27 = vpop.xlane.xlu0 %253 }
  0xb5   : > { %v846_v28 = vmax.f32 %v840_v24, %v254_v27 }
  0xb6   : > { %v302_v29 = vsub.f32 %v838_v23, %v843_v26  ;;  %355 = vst.msk [vmem:[#allocation2 + $0x10] sm:$0xff] %vm348_vm1, %v843_v26  ;;  %280 = vperm.xlu0 %629, %v843_v26  }
  0xb7   : > { %v300_v30 = vsub.f32 %v840_v24, %v846_v28  ;;  %353 = vst.msk [vmem:[#allocation2] sm:$0xff] %vm348_vm1, %v846_v28  ;;  %270 = vperm.xlu2 %628, %v846_v28  }
  0xb8   : > { %v308_v24 = vmul.f32 1.442695, %v302_v29 }
  0xbb   : > { %v263_v33 = vpop.xlane.xlu1 %262 }
  0xbc   : > { %v863_v34 = vmax.f32 %v858_v31, %v263_v33  ;;  %v257_v35 = vpop.xlane.xlu0 %256 }
  0xbd   : > { %v866_v36 = vmax.f32 %v860_v32, %v257_v35 }
  0xbe   : > { %v303_v37 = vsub.f32 %v858_v31, %v863_v34  ;;  %356 = vst.msk [vmem:[#allocation2 + $0x18] sm:$0xff] %vm348_vm1, %v863_v34  ;;  %285 = vperm.xlu1 %630, %v863_v34  }
  0xbf   : > { %v301_v38 = vsub.f32 %v860_v32, %v866_v36  ;;  %354 = vst.msk [vmem:[#allocation2 + $0x8] sm:$0xff] %vm348_vm1, %v866_v36  ;;  %275 = vperm.xlu2 %628, %v866_v36  }
  0xc7   : > { %369 = vperm.xlu2 %628, %v879_v39  }
  0xcf   : > { %372 = vperm.xlu2 %628, %v883_v40  }
  0xd7   : > { %375 = vperm.xlu2 %628, %v887_v41  }
  0xdf   : > { %378 = vperm.xlu2 %628, %v891_v42  }
 0x111   : > { %v271_v43 = vpop.permute.xlu2 %270 }
 0x112   : > { %v288_v44 = vsub.f32 %v818_v12, %v271_v43  ;;  %v289_v45 = vsub.f32 %v822_v14, %v271_v43 }
 0x114   : > { %v316_v47 = vmul.f32 1.442695, %v288_v44  ;;  %v318_v48 = vmul.f32 1.442695, %v289_v45 }
 0x116   : > { %631 = vpow2.f32 %v316_v47 }
 0x117   : > { %633 = vpow2.f32 %v318_v48 }
 0x119   : > { %v276_v50 = vpop.permute.xlu2 %275 }
 0x11a   : > { %v290_v51 = vsub.f32 %v830_v18, %v276_v50  ;;  %v291_v53 = vsub.f32 %v832_v19, %v276_v50 }
 0x11c   : > { %v632_v55 = vpop.eup %631  ;;  %v320_v57 = vmul.f32 1.442695, %v290_v51  ;;  %v322_v61 = vmul.f32 1.442695, %v291_v53  ;;  %v304_v53 = vmul.f32 1.442695, %v300_v30 }
 0x11d   : > { %v634_v56 = vpop.eup %633  ;;  %v297_v30 = vld [vmem:[#allocation3 + $0x8] sm:$0xff] }
 0x11e   : > { %v332_v58 = vadd.f32 %v634_v56, %v632_v55  ;;  %635 = vpow2.f32 %v320_v57  ;;  %v306_v55 = vmul.f32 1.442695, %v301_v38  ;;  %v310_v38 = vmul.f32 1.442695, %v303_v37 }
 0x11f   : > { %637 = vpow2.f32 %v322_v61  ;;  %v298_v61 = vld [vmem:[#allocation3 + $0x10] sm:$0xff] }
 0x120   : > { %333 = vadd.xlane.f32.xlu1 %v332_v58 }
 0x121   : > { %v370_v62 = vpop.permute.xlu2 %369 }
 0x122   : > { %vm380_vm2 = vcmp.eq.s32.totalorder %v362_v59, %v370_v62  ;;  %vm381_vm3 = vcmp.eq.s32.totalorder %v363_v60, %v370_v62  ;;  %v366_v62 = vld [vmem:[#allocation4 + $0x10] sm:$0xff] }
 0x123   : > { %v388_v63 = vsel %vm380_vm2, %v818_v12, 0.0  ;;  %v389_v0 = vsel %vm381_vm3, %v822_v14, 0.0 }
 0x124   : > { %v396_v1 = vadd.f32 %v389_v0, %v388_v63  ;;  %v636_v2 = vpop.eup %635 }
 0x125   : > { %v638_v4 = vpop.eup %637 }
 0x126   : > { %397 = vadd.xlane.f32.xlu2 %v396_v1  ;;  %v335_v13 = vadd.f32 %v638_v4, %v636_v2  ;;  %v299_v2 = vld [vmem:[#allocation3 + $0x18] sm:$0xff] }
 0x128   : > { %v281_v3 = vpop.permute.xlu0 %280 }
 0x129   : > { %v373_v5 = vpop.permute.xlu2 %372  ;;  %v292_v6 = vsub.f32 %v814_v10, %v281_v3  ;;  %v293_v7 = vsub.f32 %v816_v11, %v281_v3  ;;  %v367_v3 = vld [vmem:[#allocation4 + $0x18] sm:$0xff] }
 0x12a   : > { %vm382_vm8 = vcmp.eq.s32.totalorder %v362_v59, %v373_v5  ;;  %vm383_vm9 = vcmp.eq.s32.totalorder %v363_v60, %v373_v5 }
 0x12b   : > { %v324_v8 = vmul.f32 1.442695, %v292_v6  ;;  %v326_v9 = vmul.f32 1.442695, %v293_v7  ;;  %v391_v51 = vsel %vm383_vm9, %v832_v19, 0.0  ;;  %v365_v6 = vld [vmem:[#allocation4 + $0x8] sm:$0xff] }
 0x12d   : > { %639 = vpow2.f32 %v324_v8 }
 0x12e   : > { %641 = vpow2.f32 %v326_v9  ;;  %336 = vadd.xlane.f32.xlu2 %v335_v13 }
 0x130   : > { %v286_v15 = vpop.permute.xlu1 %285 }
 0x131   : > { %v294_v12 = vsub.f32 %v826_v16, %v286_v15  ;;  %v295_v14 = vsub.f32 %v828_v17, %v286_v15  ;;  %v376_v20 = vpop.permute.xlu2 %375 }
 0x132   : > { %vm384_vm4 = vcmp.eq.s32.totalorder %v362_v59, %v376_v20  ;;  %vm385_vm5 = vcmp.eq.s32.totalorder %v363_v60, %v376_v20 }
 0x133   : > { %v640_v21 = vpop.eup %639  ;;  %v328_v22 = vmul.f32 1.442695, %v294_v12  ;;  %v330_v25 = vmul.f32 1.442695, %v295_v14  ;;  %v392_v27 = vsel %vm384_vm4, %v814_v10, 0.0  ;;  %v393_v33 = vsel %vm385_vm5, %v816_v11, 0.0 }
 0x134   : > { %v642_v35 = vpop.eup %641  ;;  %v402_v43 = vadd.f32 %v393_v33, %v392_v27  ;;  %v390_v11 = vsel %vm382_vm8, %v830_v18, 0.0  ;;  %v364_v18 = vld [vmem:[#allocation4] sm:$0xff] }
 0x135   : > { %643 = vpow2.f32 %v328_v22  ;;  %v338_v44 = vadd.f32 %v642_v35, %v640_v21  ;;  %v399_v52 = vadd.f32 %v391_v51, %v390_v11 }
 0x136   : > { %645 = vpow2.f32 %v330_v25  ;;  %403 = vadd.xlane.f32.xlu2 %v402_v43 }
 0x137   : > { %339 = vadd.xlane.f32.xlu0 %v338_v44  ;;  %647 = vpow2.f32 %v304_v53 }
 0x138   : > { %649 = vpow2.f32 %v306_v55 }
 0x139   : > { %v379_v45 = vpop.permute.xlu2 %378  ;;  %651 = vpow2.f32 %v308_v24 }
 0x13a   : > { %vm386_vm6 = vcmp.eq.s32.totalorder %v362_v59, %v379_v45  ;;  %vm387_vm7 = vcmp.eq.s32.totalorder %v363_v60, %v379_v45  ;;  %653 = vpow2.f32 %v310_v38 }
 0x13b   : > { %v644_v46 = vpop.eup %643  ;;  %v394_v47 = vsel %vm386_vm6, %v826_v16, 0.0  ;;  %v395_v48 = vsel %vm387_vm7, %v828_v17, 0.0  ;;  %v296_v17 = vld [vmem:[#allocation3] sm:$0xff] }
 0x13c   : > { %v646_v49 = vpop.eup %645  ;;  %v405_v50 = vadd.f32 %v395_v48, %v394_v47 }
 0x13d   : > { %v341_v10 = vadd.f32 %v646_v49, %v644_v46  ;;  %v648_v16 = vpop.eup %647 }
 0x13e   : > { %v312_v54 = vmul.f32 %v648_v16, %v296_v17  ;;  %v650_v28 = vpop.eup %649 }
 0x13f   : > { %342 = vadd.xlane.f32.xlu1 %v341_v10  ;;  %406 = vadd.xlane.f32.xlu0 %v405_v50  ;;  %v313_v59 = vmul.f32 %v650_v28, %v297_v30  ;;  %v652_v60 = vpop.eup %651 }
 0x140   : > { %v314_v26 = vmul.f32 %v652_v60, %v298_v61  ;;  %v654_v1 = vpop.eup %653 }
 0x141   : > { %v315_v31 = vmul.f32 %v654_v1, %v299_v2 }
 0x147   : > { %400 = vadd.xlane.f32.xlu1 %v399_v52 }
 0x193   : > { %v334_v56 = vpop.xlane.xlu1 %333 }
 0x194   : > { %v344_v57 = vadd.f32 %v334_v56, %v312_v54 }
 0x196   : > { %349 = vst.msk [vmem:[#allocation3] sm:$0xff] %vm348_vm1, %v344_v57 }
 0x199   : > { %v398_v19 = vpop.xlane.xlu2 %397 }
 0x19a   : > { %v408_v58 = vadd.f32 %v398_v19, %v364_v18 }
 0x19c   : > { %412 = vst.msk [vmem:[#allocation4] sm:$0xff] %vm348_vm1, %v408_v58 }
 0x1a1   : > { %v337_v32 = vpop.xlane.xlu2 %336 }
 0x1a2   : > { %v345_v36 = vadd.f32 %v337_v32, %v313_v59 }
 0x1a4   : > { %350 = vst.msk [vmem:[#allocation3 + $0x8] sm:$0xff] %vm348_vm1, %v345_v36 }
 0x1a9   : > { %v404_v23 = vpop.xlane.xlu2 %403 }
 0x1aa   : > { %v410_v29 = vadd.f32 %v404_v23, %v366_v62  ;;  %v340_v63 = vpop.xlane.xlu0 %339 }
 0x1ab   : > { %v346_v0 = vadd.f32 %v340_v63, %v314_v26 }
 0x1ac   : > { %414 = vst.msk [vmem:[#allocation4 + $0x10] sm:$0xff] %vm348_vm1, %v410_v29 }
 0x1ad   : > { %351 = vst.msk [vmem:[#allocation3 + $0x10] sm:$0xff] %vm348_vm1, %v346_v0 }
 0x1b2   : > { %v343_v34 = vpop.xlane.xlu1 %342  ;;  %v407_v37 = vpop.xlane.xlu0 %406 }
 0x1b3   : > { %v347_v4 = vadd.f32 %v343_v34, %v315_v31  ;;  %v411_v5 = vadd.f32 %v407_v37, %v367_v3 }
 0x1b5   : > { %352 = vst.msk [vmem:[#allocation3 + $0x18] sm:$0xff] %vm348_vm1, %v347_v4 }
 0x1b6   : > { %415 = vst.msk [vmem:[#allocation4 + $0x18] sm:$0xff] %vm348_vm1, %v411_v5 }
 0x1b9   : > { %419 = sbr.rel (%p564_p13) target bundleno = 465 (0x1d1), region = 59 }
 0x1ba   : > { %v401_v7 = vpop.xlane.xlu1 %400 }
 0x1bb   : > { %v409_v8 = vadd.f32 %v401_v7, %v365_v6 }
 0x1bd   : > { %413 = vst.msk [vmem:[#allocation4 + $0x8] sm:$0xff] %vm348_vm1, %v409_v8 }
 0x1be   : > { %v428_v9 = vld [vmem:[#allocation3] sm:$0xff]  ;;  %v429_v13 = vld [vmem:[#allocation3 + $0x8] sm:$0xff]  ;;  %v430_v15 = vld [vmem:[#allocation3 + $0x10] sm:$0xff]  ;;  %vm420_vm10 = vcmp.ne.s32.totalorder %v879_v39, 4294967295  ;;  %vm421_vm11 = vcmp.ne.s32.totalorder %v883_v40, 4294967295  ;;  %vm422_vm12 = vcmp.ne.s32.totalorder %v887_v41, 4294967295 }
 0x1bf   : > { %655 = vlog2.f32 %v428_v9  ;;  %v431_v12 = vld [vmem:[#allocation3 + $0x18] sm:$0xff]  ;;  %v424_v20 = vld [vmem:[#allocation2] sm:$0xff]  ;;  %v425_v25 = vld [vmem:[#allocation2 + $0x8] sm:$0xff]  ;;  %vm423_vm13 = vcmp.ne.s32.totalorder %v891_v42, 4294967295 }
 0x1c0   : > { %657 = vlog2.f32 %v429_v13  ;;  %v444_v33 = vld [vmem:[#allocation4] sm:$0xff]  ;;  %v426_v43 = vld [vmem:[#allocation2 + $0x10] sm:$0xff]  ;;  %v427_v48 = vld [vmem:[#allocation2 + $0x18] sm:$0xff] }
 0x1c1   : > { %659 = vlog2.f32 %v430_v15  ;;  %v446_v50 = vld [vmem:[#allocation4 + $0x10] sm:$0xff]  ;;  %v447_v52 = vld [vmem:[#allocation4 + $0x18] sm:$0xff] }
 0x1c2   : > { %661 = vlog2.f32 %v431_v12 }
 0x1c4   : > { %v445_v46 = vld [vmem:[#allocation4 + $0x8] sm:$0xff] }
 0x1c5   : > { %v656_v14 = vpop.eup %655 }
 0x1c6   : > { %v658_v21 = vpop.eup %657  ;;  %v433_v22 = vmul.f32 0.6931472, %v656_v14 }
 0x1c7   : > { %v660_v27 = vpop.eup %659  ;;  %v435_v35 = vmul.f32 0.6931472, %v658_v21 }
 0x1c8   : > { %v662_v44 = vpop.eup %661  ;;  %v440_v45 = vadd.f32 %v433_v22, %v424_v20  ;;  %v437_v47 = vmul.f32 0.6931472, %v660_v27 }
 0x1c9   : > { %v441_v49 = vadd.f32 %v435_v35, %v425_v25  ;;  %v439_v10 = vmul.f32 0.6931472, %v662_v44 }
 0x1ca   : > { %v448_v11 = vsub.f32 %v440_v45, %v444_v33  ;;  %v442_v51 = vadd.f32 %v437_v47, %v426_v43 }
 0x1cb   : > { %v449_v53 = vsub.f32 %v441_v49, %v445_v46  ;;  %v443_v16 = vadd.f32 %v439_v10, %v427_v48 }
 0x1cc   : > { %v452_v17 = vsel %vm420_vm10, %v448_v11, 0.0  ;;  %v450_v54 = vsub.f32 %v442_v51, %v446_v50 }
 0x1cd   : > { %456 = vst.msk [vmem:[%s811_s25] sm:$0xff] %vm348_vm1, %v452_v17  ;;  %v453_v39 = vsel %vm421_vm11, %v449_v53, 0.0  ;;  %v451_v55 = vsub.f32 %v443_v16, %v447_v52 }
 0x1ce   : > { %457 = vst.msk [vmem:[%s811_s25 + $0x8] sm:$0xff] %vm348_vm1, %v453_v39  ;;  %v454_v56 = vsel %vm422_vm12, %v450_v54, 0.0 }
 0x1cf   : > { %458 = vst.msk [vmem:[%s811_s25 + $0x10] sm:$0xff] %vm348_vm1, %v454_v56  ;;  %v455_v40 = vsel %vm423_vm13, %v451_v55, 0.0 }
 0x1d0   : > { %459 = vst.msk [vmem:[%s811_s25 + $0x18] sm:$0xff] %vm348_vm1, %v455_v40 }
 0x1d1 PF: > { %s12_s15 = sadd.s32 1, %s717_s15   ;;  %s968_s9 = smov %s697_s10 }
 0x1d2   : > { %p9_p0 = scmp.ge.s32.totalorder %s12_s15, 10   ;;  %s969_s10 = smov %s788_s22 }
 0x1d3   : > { %s970_s11 = smov %s709_s13  ;;  %s971_s12 = smov %s713_s14 }
 0x1d4   : > { %s972_s13 = smov %s975_s16  ;;  %s973_s14 = smov %s979_s17 }
 0x1d5   :  { %11 = sbr.rel (!%p9_p0) target bundleno = 4 (0x4), region = 97 }

</bundles_post_ra>
